<compile_context>
chip_gen: v7x
topology: tpu7x:2x2x1
jax: 0.10.0
libtpu: 0.0.40
codegen_flags: <defaults>
</compile_context>

<pallas_src>
import functools

import jax
import jax.numpy as jnp
from jax.experimental import pallas as pl
from jax.experimental.pallas import tpu as pltpu


# ----------------------------------------------------------------------------
# Kernels
# ----------------------------------------------------------------------------
def _layernorm_kernel(x_ref, w_ref, b_ref, o_ref, *, eps, hidden):
    """Standard path: one row per grid row, H spans the lane axis.

    x_ref: (ROW_TILE, H), w_ref/b_ref: (1, H) f32, o_ref: (ROW_TILE, H).
    Two-pass mean/variance in f32 (matches the PyTorch module exactly).
    """
    x = x_ref[...].astype(jnp.float32)
    inv_h = jnp.float32(1.0 / hidden)

    mean = jnp.sum(x, axis=-1, keepdims=True) * inv_h
    xc = x - mean
    var = jnp.sum(xc * xc, axis=-1, keepdims=True) * inv_h
    inv_std = jax.lax.rsqrt(var + jnp.float32(eps))

    # TODO(synk): on v6e/v7x with bf16 I/O the normalize+affine could run in
    # packed bf16 VALU to halve elementwise passes; kept f32 for v5e compat.
    o_ref[...] = (w_ref[...] * (xc * inv_std) + b_ref[...]).astype(o_ref.dtype)


def _layernorm_packed_kernel(x_ref, w_ref, b_ref, p_ref, o_ref, *, eps):
    """Lane-packed path for H < 128: G = 128 // H rows folded per packed row.

    x_ref: (ROW_TILE, W) with W = G*H = 128 (lane-dense), w_ref/b_ref: (1, W)
    (weight/bias tiled G times), p_ref: (W, W) block-diagonal segment-averaging
    matrix P[i, j] = 1/H if i//H == j//H else 0.

    Per-segment reductions and the segment-broadcast both go through the idle
    MXU (x @ P), so there is no cross-lane relayout and all stores are full,
    unmasked 128-lane writes.
    """
    x = x_ref[...].astype(jnp.float32)
    p = p_ref[...]

    mean = jnp.dot(x, p, preferred_element_type=jnp.float32)       # per-segment mean, broadcast
    xc = x - mean
    var = jnp.dot(xc * xc, p, preferred_element_type=jnp.float32)  # per-segment var, broadcast
    inv_std = jax.lax.rsqrt(var + jnp.float32(eps))

    o_ref[...] = (w_ref[...] * (xc * inv_std) + b_ref[...]).astype(o_ref.dtype)


# ----------------------------------------------------------------------------
# Tiling / budget helpers
# ----------------------------------------------------------------------------
_MAX_ROW_TILE = 8192  # raised from 2048; still bounded by the byte budget below.


def _vmem_budgets():
    """(block byte budget, scoped vmem_limit_bytes), generation-aware."""
    # Safe defaults (fit v7x's 64 MiB physical VMEM per TensorCore).
    block_budget, vmem_limit = 24 << 20, 48 << 20
    try:
        info = pltpu.get_tpu_info()
        cap = getattr(info, "vmem_capacity_bytes", None)
        if cap is not None and cap >= (100 << 20):
            # v5e / v6e class chips: 128 MiB physical -> use more of it.
            block_budget, vmem_limit = 48 << 20, 96 << 20
    except Exception:
        pass
    return block_budget, vmem_limit


def _sublane_multiple(itemsize):
    # Sub-32-bit dtypes pack 2/4 rows per sublane; align the row tile to that.
    if itemsize >= 4:
        return 8
    if itemsize == 2:
        return 16
    return 32


def _pick_row_tile(rows, width, itemsize, block_budget):
    sub = _sublane_multiple(itemsize)
    # Per grid step: input + output blocks double-buffered (4 copies in the I/O
    # dtype) plus ~3 full-width f32 intermediates inside the kernel.
    bytes_per_row = 4 * width * itemsize + 3 * width * 4
    row_tile = max(sub, block_budget // bytes_per_row)
    row_tile = min(row_tile, _MAX_ROW_TILE)
    row_tile = max(sub, (row_tile // sub) * sub)
    rows_padded = max(sub, ((rows + sub - 1) // sub) * sub)
    return min(row_tile, rows_padded)


def _round_row_tile(row_tile, itemsize):
    sub = _sublane_multiple(itemsize)
    return max(sub, (int(row_tile) // sub) * sub)


# ----------------------------------------------------------------------------
# Wrapper
# ----------------------------------------------------------------------------
def layer_norm(x, weight, bias, eps=1e-12, row_tile=None):
    """x: (..., H); weight, bias: (H,). Returns same shape/dtype as x."""
    orig_shape = x.shape
    H = orig_shape[-1]
    rows = 1
    for d in orig_shape[:-1]:
        rows *= d

    x2 = x.reshape(rows, H)
    w32 = weight.astype(jnp.float32)
    b32 = bias.astype(jnp.float32)
    itemsize = jnp.dtype(x.dtype).itemsize
    block_budget, vmem_limit = _vmem_budgets()
    compiler_params = pltpu.CompilerParams(
        # "parallel" lets the row axis shard across v7x's 2 TensorCores;
        # neutral on v5e/v6e.
        dimension_semantics=("parallel",),
        vmem_limit_bytes=vmem_limit,
    )

    use_packed = (H < 128) and (128 % H == 0) and rows > 0
    # TODO(synk): H < 128 with 128 % H != 0 still takes the masked-store path.

    if use_packed:
        G = 128 // H
        W = G * H  # == 128, lane-dense
        rows_pad = ((rows + G - 1) // G) * G
        if rows_pad != rows:
            x2 = jnp.pad(x2, ((0, rows_pad - rows), (0, 0)))
        prows = rows_pad // G
        # Row-major (rows_pad, H) -> (prows, G*H) is a free (bitcast) reshape.
        xp = x2.reshape(prows, W)
        wp = jnp.tile(w32, G).reshape(1, W)
        bp = jnp.tile(b32, G).reshape(1, W)
        seg = jnp.arange(W, dtype=jnp.int32) // H
        pmat = (seg[:, None] == seg[None, :]).astype(jnp.float32) * jnp.float32(1.0 / H)

        if row_tile is None:
            rt = _pick_row_tile(prows, W, itemsize, block_budget)
        else:
            rt = _round_row_tile(row_tile, itemsize)
        grid = (pl.cdiv(prows, rt),)

        out = pl.pallas_call(
            functools.partial(_layernorm_packed_kernel, eps=eps),
            out_shape=jax.ShapeDtypeStruct((prows, W), x.dtype),
            grid_spec=pltpu.PrefetchScalarGridSpec(
                num_scalar_prefetch=0,
                grid=grid,
                in_specs=[
                    pl.BlockSpec((rt, W), lambda i: (i, 0)),
                    pl.BlockSpec((1, W), lambda i: (0, 0)),
                    pl.BlockSpec((1, W), lambda i: (0, 0)),
                    pl.BlockSpec((W, W), lambda i: (0, 0)),
                ],
                out_specs=pl.BlockSpec((rt, W), lambda i: (i, 0)),
            ),
            compiler_params=compiler_params,
        )(xp, wp, bp, pmat)

        out = out.reshape(rows_pad, H)
        if rows_pad != rows:
            out = out[:rows]
        return out.reshape(orig_shape)

    # ---- standard path (H >= 128, or H not dividing 128) ----
    w2 = w32.reshape(1, H)
    b2 = b32.reshape(1, H)
    if row_tile is None:
        rt = _pick_row_tile(rows, H, itemsize, block_budget)
    else:
        rt = _round_row_tile(row_tile, itemsize)
    grid = (pl.cdiv(rows, rt),)

    out = pl.pallas_call(
        functools.partial(_layernorm_kernel, eps=eps, hidden=H),
        out_shape=jax.ShapeDtypeStruct((rows, H), x.dtype),
        grid_spec=pltpu.PrefetchScalarGridSpec(
            num_scalar_prefetch=0,
            grid=grid,
            in_specs=[
                pl.BlockSpec((rt, H), lambda i: (i, 0)),
                pl.BlockSpec((1, H), lambda i: (0, 0)),
                pl.BlockSpec((1, H), lambda i: (0, 0)),
            ],
            out_specs=pl.BlockSpec((rt, H), lambda i: (i, 0)),
        ),
        compiler_params=compiler_params,
    )(x2, w2, b2)
    return out.reshape(orig_shape)


# ----------------------------------------------------------------------------
# Reference + self-check
# ----------------------------------------------------------------------------
def _reference_layer_norm(x, weight, bias, eps):
    u = jnp.mean(x, axis=-1, keepdims=True)
    s = jnp.mean((x - u) ** 2, axis=-1, keepdims=True)
    return weight * ((x - u) / jnp.sqrt(s + eps)) + bias


if __name__ == "__main__":
    key = jax.random.PRNGKey(0)

    # Module-implied shape: (batch=2, seq=8, hidden=32). H=32 -> lane-packed path.
    B, S, H = 2, 8, 32
    x = jax.random.normal(key, (B, S, H), dtype=jnp.float32)
    # Matches nn.Parameter(torch.ones(hidden)) / torch.zeros(hidden) init.
    weight = jnp.ones((H,), dtype=jnp.float32)
    bias = jnp.zeros((H,), dtype=jnp.float32)

    out = jax.block_until_ready(layer_norm(x, weight, bias, eps=1e-12))
    ref = _reference_layer_norm(x, weight, bias, 1e-12)
    assert out.shape == x.shape and out.dtype == x.dtype
    assert jnp.allclose(out, ref, atol=1e-4, rtol=1e-4)

    # Ragged row count (rows not a multiple of the packing factor G=4).
    x2 = jax.random.normal(jax.random.PRNGKey(1), (3, 5, H), dtype=jnp.float32)
    out2 = jax.block_until_ready(layer_norm(x2, weight, bias, eps=1e-12))
    ref2 = _reference_layer_norm(x2, weight, bias, 1e-12)
    assert out2.shape == x2.shape
    assert jnp.allclose(out2, ref2, atol=1e-4, rtol=1e-4)

    # Standard (H >= 128) path with non-trivial affine params.
    H3 = 256
    k3, kw, kb = jax.random.split(jax.random.PRNGKey(2), 3)
    x3 = jax.random.normal(k3, (4, 6, H3), dtype=jnp.float32)
    w3 = jax.random.normal(kw, (H3,), dtype=jnp.float32)
    b3 = jax.random.normal(kb, (H3,), dtype=jnp.float32)
    out3 = jax.block_until_ready(layer_norm(x3, w3, b3, eps=1e-12))
    ref3 = _reference_layer_norm(x3, w3, b3, 1e-12)
    assert out3.shape == x3.shape
    assert jnp.allclose(out3, ref3, atol=1e-4, rtol=1e-4)

    print("KERNEL_OK")
</pallas_src>

<mosaic_0001>
module attributes {stable_mosaic.version = 11 : i64} {
  func.func @_layernorm_packed_kernel(%arg0: i32, %arg1: memref<8x128xf32, #tpu.memory_space<vmem>>, %arg2: memref<1x128xf32, #tpu.memory_space<vmem>>, %arg3: memref<1x128xf32, #tpu.memory_space<vmem>>, %arg4: memref<128x128xf32, #tpu.memory_space<vmem>>, %arg5: memref<8x128xf32, #tpu.memory_space<vmem>>) attributes {dimension_semantics = [#tpu.dimension_semantics<parallel>], iteration_bounds = array<i64: 1>, scalar_prefetch = 0 : i64, scratch_operands = 0 : i64, tpu.core_type = #tpu.core_type<tc>, window_params = [{transform_indices = @transform_0, window_bounds = array<i64: 8, 128>}, {pipeline_mode = #tpu.pipeline_mode<synchronous>, transform_indices = @transform_1, window_bounds = array<i64: 1, 128>}, {pipeline_mode = #tpu.pipeline_mode<synchronous>, transform_indices = @transform_2, window_bounds = array<i64: 1, 128>}, {pipeline_mode = #tpu.pipeline_mode<synchronous>, transform_indices = @transform_3, window_bounds = array<i64: 128, 128>}, {transform_indices = @transform_4, window_bounds = array<i64: 8, 128>}]} {
    %c0 = arith.constant 0 : index
    %c0_0 = arith.constant 0 : index
    %0 = vector.load %arg1[%c0, %c0_0] : memref<8x128xf32, #tpu.memory_space<vmem>>, vector<8x128xf32>
    %c0_1 = arith.constant 0 : index
    %c0_2 = arith.constant 0 : index
    %1 = vector.load %arg4[%c0_1, %c0_2] : memref<128x128xf32, #tpu.memory_space<vmem>>, vector<128x128xf32>
    %cst = arith.constant dense<0.000000e+00> : vector<8x128xf32>
    %2 = tpu.matmul %0, %1, %cst {dimension_numbers = #tpu.dot_dimension_numbers<[1], [0], [0], [1], [0, 0, 1, 1], [], []>} : vector<8x128xf32>, vector<128x128xf32>, vector<8x128xf32> -> vector<8x128xf32>
    %3 = arith.subf %0, %2 : vector<8x128xf32>
    %4 = arith.mulf %3, %3 : vector<8x128xf32>
    %cst_3 = arith.constant dense<0.000000e+00> : vector<8x128xf32>
    %5 = tpu.matmul %4, %1, %cst_3 {dimension_numbers = #tpu.dot_dimension_numbers<[1], [0], [0], [1], [0, 0, 1, 1], [], []>} : vector<8x128xf32>, vector<128x128xf32>, vector<8x128xf32> -> vector<8x128xf32>
    %cst_4 = arith.constant 9.99999996E-13 : f32
    %6 = vector.broadcast %cst_4 : f32 to vector<8x128xf32>
    %7 = arith.addf %5, %6 : vector<8x128xf32>
    %8 = math.rsqrt %7 : vector<8x128xf32>
    %c0_5 = arith.constant 0 : index
    %c0_6 = arith.constant 0 : index
    %9 = vector.load %arg2[%c0_5, %c0_6] : memref<1x128xf32, #tpu.memory_space<vmem>>, vector<1x128xf32>
    %10 = arith.mulf %3, %8 : vector<8x128xf32>
    %11 = vector.broadcast %9 : vector<1x128xf32> to vector<8x128xf32>
    %12 = arith.mulf %11, %10 : vector<8x128xf32>
    %c0_7 = arith.constant 0 : index
    %c0_8 = arith.constant 0 : index
    %13 = vector.load %arg3[%c0_7, %c0_8] : memref<1x128xf32, #tpu.memory_space<vmem>>, vector<1x128xf32>
    %14 = vector.broadcast %13 : vector<1x128xf32> to vector<8x128xf32>
    %15 = arith.addf %12, %14 : vector<8x128xf32>
    %c0_9 = arith.constant 0 : index
    %c0_10 = arith.constant 0 : index
    %16 = vector.load %arg5[%c0_9, %c0_10] : memref<8x128xf32, #tpu.memory_space<vmem>>, vector<8x128xf32>
    tpu.vector_store %arg5[%c0_9, %c0_10], %15 {strides = array<i32>} : memref<8x128xf32, #tpu.memory_space<vmem>>, vector<8x128xf32>,
    return
  }
  func.func @transform_0(%arg0: i32) -> (i32, i32) {
    %c0_i32 = arith.constant 0 : i32
    %c0_i32_0 = arith.constant 0 : i32
    return %arg0, %c0_i32 : i32, i32
  }
  func.func @transform_1(%arg0: i32) -> (i32, i32) {
    %c0_i32 = arith.constant 0 : i32
    %c0_i32_0 = arith.constant 0 : i32
    %c0_i32_1 = arith.constant 0 : i32
    return %c0_i32, %c0_i32_0 : i32, i32
  }
  func.func @transform_2(%arg0: i32) -> (i32, i32) {
    %c0_i32 = arith.constant 0 : i32
    %c0_i32_0 = arith.constant 0 : i32
    %c0_i32_1 = arith.constant 0 : i32
    return %c0_i32, %c0_i32_0 : i32, i32
  }
  func.func @transform_3(%arg0: i32) -> (i32, i32) {
    %c0_i32 = arith.constant 0 : i32
    %c0_i32_0 = arith.constant 0 : i32
    %c0_i32_1 = arith.constant 0 : i32
    return %c0_i32, %c0_i32_0 : i32, i32
  }
  func.func @transform_4(%arg0: i32) -> (i32, i32) {
    %c0_i32 = arith.constant 0 : i32
    %c0_i32_0 = arith.constant 0 : i32
    return %arg0, %c0_i32 : i32, i32
  }
}

</mosaic_0001>

<bundles_post_ra>
// kernel: tpu_custom_call.1
= control target key start
LH: loop header
LB: loop body
LE: loop exit
PB: predicated region body
PF: predicated region fallthrough
CT: control target
= control target key end

     0   :  { %9 = vsyncpa [#allocation3], 0  ;;  %s563_s0 = inlined_call_operand.hbm [shape: f32[4,128], index: 0, kind: input, shape index: {}]   ;;  %s564_s1 = inlined_call_operand.vmem [shape: f32[1,128], index: 1, kind: input, shape index: {}]   ;;  %s565_s2 = inlined_call_operand.vmem [shape: f32[1,128], index: 2, kind: input, shape index: {}]   ;;  %s566_s3 = inlined_call_operand.hbm [shape: f32[128,128], index: 3, kind: input, shape index: {}]   ;;  %s567_s4 = inlined_call_operand.hbm [shape: f32[4,128], index: 4, kind: output, shape index: {}]  }
   0x1   :  { %10 = vsyncpa [#allocation6], 0 }
   0x2   :  { %11 = vsyncpa [#allocation4], 0 }
   0x3   :  { %16 = vsyncadd [#allocation3], 64  ;;  %s480_s15 = smov [#allocation2]   ;;  %s408_s19 = scalar_lea.hbm %s563_s0, 64 }
   0x4   :  { %s17_s16 = sshll.u32 %s480_s15, 4  ;;  %p409_p0 = scmp.ne.s32.totalorder %s563_s0, %s408_s19  ;;  %s18_s16 = int_to_ptr.vmem [resolvable:$true] %s17_s16 }
   0x5   :  { %p412_p1 = scmp.lt.u32.totalorder %s408_s19, %s563_s0 }
   0x7   :  { %p414_p2 = pnand %p412_p1, %p409_p0 }
   0x9   :  { %417 = shalt.err (!%p414_p2)
}
   0xa   :  { %s418_s24 = scalar_lea.vmem %s18_s16, 64  ;;  %s422_s25 = scalar_lea.vmem %s18_s16, 128 }
   0xb   :  { %p419_p3 = scmp.ne.s32.totalorder %s18_s16, %s418_s24  ;;  %p423_p4 = scmp.lt.s32.totalorder %s18_s16, %s18_s16 }
   0xc   :  { %p424_p5 = scmp.lt.s32.totalorder %s422_s25, %s418_s24 }
   0xe   :  { %p425_p6 = por %p424_p5, %p423_p4 }
  0x10   :  { %p426_p7 = pnand %p425_p6, %p419_p3 }
  0x12   :  { %429 = shalt.err (!%p426_p7)
}
  0x13   :  { %s481_s26 = smov 64   ;;  %s482_s27 = smov 4  }
  0x14   :  { %23 = dma.hbm_to_vmem [thread:$0]  %s563_s0, 64, %s18_s16, [#allocation3], %s481_s26, %s481_s26, %s482_s27  }
  0x15   :  { %s483_s30 = smov [#allocation5]   ;;  %s430_s8 = scalar_lea.hbm %s566_s3, 2048 }
  0x16   :  { %s33_s5 = sshll.u32 %s483_s30, 4  ;;  %p431_p8 = scmp.ne.s32.totalorder %s566_s3, %s430_s8  ;;  %s34_s5 = int_to_ptr.vmem [resolvable:$true] %s33_s5 }
  0x17   :  { %p434_p9 = scmp.lt.u32.totalorder %s430_s8, %s566_s3 }
  0x19   :  { %p436_p10 = pnand %p434_p9, %p431_p8 }
  0x1b   :  { %439 = shalt.err (!%p436_p10)
}
  0x1c   :  { %s440_s13 = scalar_lea.vmem %s34_s5, 2048  ;;  %p445_p12 = scmp.lt.s32.totalorder %s34_s5, %s34_s5 }
  0x1d   :  { %p441_p11 = scmp.ne.s32.totalorder %s34_s5, %s440_s13  ;;  %p446_p13 = scmp.lt.s32.totalorder %s440_s13, %s440_s13 }
  0x1f   :  { %p447_p0 = por %p446_p13, %p445_p12 }
  0x21   :  { %p448_p1 = pnand %p447_p0, %p441_p11 }
  0x23   :  { %451 = shalt.err (!%p448_p1)
}
  0x24   :  { %s484_s0 = smov 128   ;;  %s485_s14 = smov 8  }
  0x25   :  { %39 = dma.hbm_to_vmem [thread:$0]  %s566_s3, 2048, %s34_s5, [#allocation6], %s484_s0, %s484_s0, %s485_s14  }
  0x26   :  { %474 = dma.done.wait [#allocation3], 128  }
  0x27   :  { %475 = vsyncadd [#allocation3], 4294967168 }
  0x28   :  { %476 = dma.done.wait [#allocation6], 2048  }
  0x29   :  { %477 = vsyncadd [#allocation6], 4294965248  ;;  %v486_v0 = vmov 0.0|0.0   ;;  %vm487_vm0 = vmmov 0   ;;  %v488_v1 = vmov 0.0   ;;  %v47_v2 = vld [vmem:[#allocation5] sm:$0xff] }
  0x2a   :  { %348 = vmatprep.subr.bf16.mxu0 %v486_v0  ;;  %310 = vmatprep.mubr.msk.f32.mxu0 %vm487_vm0, %v488_v1  ;;  %v48_v3 = vld [vmem:[#allocation5 + $0x8] sm:$0xff]  ;;  %v49_v4 = vld [vmem:[#allocation5 + $0x10] sm:$0xff]  ;;  %v50_v6 = vld [vmem:[#allocation5 + $0x18] sm:$0xff] }
  0x2b   :  { %372 = vmatprep.subr.bf16.mxu1 %v486_v0  ;;  %345 = vmatprep.mubr.msk.f32.mxu1 %vm487_vm0, %v488_v1  ;;  %v349_v5 = vpack.c.bf16 %v48_v3, %v47_v2  ;;  %v352_v7 = vpack.c.bf16 %v50_v6, %v49_v4  ;;  %v51_v8 = vld [vmem:[#allocation5 + $0x20] sm:$0xff]  ;;  %v52_v9 = vld [vmem:[#allocation5 + $0x28] sm:$0xff]  ;;  %v53_v11 = vld [vmem:[#allocation5 + $0x30] sm:$0xff] }
  0x2c   :  { %v355_v10 = vpack.c.bf16 %v52_v9, %v51_v8  ;;  %v54_v12 = vld [vmem:[#allocation5 + $0x38] sm:$0xff]  ;;  %v55_v14 = vld [vmem:[#allocation5 + $0x40] sm:$0xff]  ;;  %v56_v15 = vld [vmem:[#allocation5 + $0x48] sm:$0xff] }
  0x2d   :  { %350 = vmatpush3.bf16.msra.mxu0 %v349_v5  ;;  %374 = vmatpush3.bf16.msra.mxu1 %v349_v5  ;;  %v358_v13 = vpack.c.bf16 %v54_v12, %v53_v11  ;;  %v361_v16 = vpack.c.bf16 %v56_v15, %v55_v14  ;;  %v57_v17 = vld [vmem:[#allocation5 + $0x50] sm:$0xff]  ;;  %v58_v18 = vld [vmem:[#allocation5 + $0x58] sm:$0xff]  ;;  %v59_v20 = vld [vmem:[#allocation5 + $0x60] sm:$0xff] }
  0x2e   :  { %351 = vmatprep.subr.bf16.mxu0 %v486_v0  ;;  %375 = vmatprep.subr.bf16.mxu1 %v486_v0  ;;  %v364_v19 = vpack.c.bf16 %v58_v18, %v57_v17  ;;  %v60_v21 = vld [vmem:[#allocation5 + $0x68] sm:$0xff]  ;;  %v61_v23 = vld [vmem:[#allocation5 + $0x70] sm:$0xff]  ;;  %v62_v24 = vld [vmem:[#allocation5 + $0x78] sm:$0xff] }
  0x2f   :  { %v367_v22 = vpack.c.bf16 %v60_v21, %v59_v20  ;;  %v370_v25 = vpack.c.bf16 %v62_v24, %v61_v23  ;;  %v46_v26 = vld [vmem:[#allocation2] sm:$0xff] }
  0x30   :  { %v242_v35 = vld [vmem:[%s564_s1] ss:$0 sm:$0xff] }
  0x31   :  { %353 = vmatpush3.bf16.msra.mxu0 %v352_v7  ;;  %377 = vmatpush3.bf16.msra.mxu1 %v352_v7  ;;  %v243_v37 = vld [vmem:[%s565_s2] ss:$0 sm:$0xff] }
  0x32   :  { %354 = vmatprep.subr.bf16.mxu0 %v486_v0  ;;  %378 = vmatprep.subr.bf16.mxu1 %v486_v0 }
  0x35   :  { %356 = vmatpush3.bf16.msra.mxu0 %v355_v10  ;;  %380 = vmatpush3.bf16.msra.mxu1 %v355_v10 }
  0x36   :  { %357 = vmatprep.subr.bf16.mxu0 %v486_v0  ;;  %381 = vmatprep.subr.bf16.mxu1 %v486_v0 }
  0x39   :  { %359 = vmatpush3.bf16.msra.mxu0 %v358_v13  ;;  %383 = vmatpush3.bf16.msra.mxu1 %v358_v13 }
  0x3a   :  { %360 = vmatprep.subr.bf16.mxu0 %v486_v0  ;;  %384 = vmatprep.subr.bf16.mxu1 %v486_v0 }
  0x3d   :  { %362 = vmatpush3.bf16.msra.mxu0 %v361_v16  ;;  %386 = vmatpush3.bf16.msra.mxu1 %v361_v16 }
  0x3e   :  { %363 = vmatprep.subr.bf16.mxu0 %v486_v0  ;;  %387 = vmatprep.subr.bf16.mxu1 %v486_v0 }
  0x41   :  { %365 = vmatpush3.bf16.msra.mxu0 %v364_v19  ;;  %389 = vmatpush3.bf16.msra.mxu1 %v364_v19 }
  0x42   :  { %366 = vmatprep.subr.bf16.mxu0 %v486_v0  ;;  %390 = vmatprep.subr.bf16.mxu1 %v486_v0 }
  0x45   :  { %368 = vmatpush3.bf16.msra.mxu0 %v367_v22  ;;  %392 = vmatpush3.bf16.msra.mxu1 %v367_v22 }
  0x46   :  { %369 = vmatprep.subr.bf16.mxu0 %v486_v0  ;;  %393 = vmatprep.subr.bf16.mxu1 %v486_v0 }
  0x49   :  { %371 = vmatpush3.bf16.msra.mxu0 %v370_v25  ;;  %395 = vmatpush3.bf16.msra.mxu1 %v370_v25 }
  0x4c   :  { %311 = vmatmul.mubr.f32.vlgmr.msra.gmra.mrb[0].mxu0 %v46_v26 }
 0x11f   :  { %v129_v27 = vpop.f32.mrb[0].mxu0 }
 0x120   :  { %v133_v28 = vsub.f32 %v46_v26, %v129_v27  ;;  %v312_v29 = vpop.f32.mrb[1].mxu0 }
 0x122   :  { %v134_v30 = vmul.f32 %v133_v28, %v133_v28 }
 0x124   :  { %346 = vmatmul.mubr.f32.vlgmr.msra.gmra.mrb[0].mxu1 %v134_v30 }
 0x1f7   :  { %v201_v31 = vpop.f32.mrb[0].mxu1 }
 0x1f8   :  { %v202_v32 = vadd.f32 1e-12, %v201_v31  ;;  %v347_v33 = vpop.f32.mrb[1].mxu1 }
 0x1fa   :  { %406 = vrsqrt.f32 %v202_v32 }
 0x204   :  { %v407_v34 = vpop.eup %406 }
 0x205   :  { %v207_v36 = vmul.f32 %v407_v34, %v133_v28 }
 0x207   :  { %v214_v38 = vmul.f32 %v242_v35, %v207_v36 }
 0x209   :  { %v222_v39 = vadd.f32 %v243_v37, %v214_v38 }
 0x20b   :  { %223 = vst [vmem:[#allocation7] sm:$0xff] %v222_v39 }
 0x20c   :  { %228 = vsyncadd [#allocation4], 64  ;;  %s489_s20 = smov [#allocation7]  }
 0x20d   :  { %s229_s21 = sshll.u32 %s489_s20, 4  ;;  %s230_s21 = int_to_ptr.vmem [resolvable:$true] %s229_s21 }
 0x20e   :  { %s452_s22 = scalar_lea.vmem %s230_s21, 64  ;;  %s456_s23 = scalar_lea.vmem %s230_s21, 128 }
 0x20f   :  { %p453_p2 = scmp.ne.s32.totalorder %s230_s21, %s452_s22  ;;  %p457_p3 = scmp.lt.s32.totalorder %s230_s21, %s230_s21 }
 0x210   :  { %p458_p4 = scmp.lt.s32.totalorder %s456_s23, %s452_s22 }
 0x212   :  { %p459_p5 = por %p458_p4, %p457_p3 }
 0x214   :  { %p460_p6 = pnand %p459_p5, %p453_p2 }
 0x216   :  { %463 = shalt.err (!%p460_p6)
}
 0x217   :  { %s464_s25 = scalar_lea.hbm %s567_s4, 64 }
 0x218   :  { %p465_p7 = scmp.ne.s32.totalorder %s567_s4, %s464_s25  ;;  %p468_p8 = scmp.lt.u32.totalorder %s464_s25, %s567_s4 }
 0x21a   :  { %p470_p9 = pnand %p468_p8, %p465_p7 }
 0x21c   :  { %473 = shalt.err (!%p470_p9)
}
 0x21d   :  { %235 = dma.vmem_to_hbm [thread:$0]  %s230_s21, 64, %s567_s4, [#allocation4], %s481_s26, %s481_s26, %s482_s27  }
 0x21e   :  { %478 = dma.done.wait [#allocation4], 128  }
 0x21f   :  { %479 = vsyncadd [#allocation4], 4294967168 }
 0x220   :  { %239 = vsyncpa [#allocation3], 1 }
 0x221   :  { %240 = vsyncpa [#allocation6], 1 }
 0x222   :  { %241 = vsyncpa [#allocation4], 1 }

</bundles_post_ra>
